<compile_context>
chip_gen: v7x
topology: tpu7x:2x2x1
jax: 0.10.0
libtpu: 0.0.40
codegen_flags: <defaults>
</compile_context>

<pallas_src>
import functools

import jax
import jax.numpy as jnp
from jax.experimental import pallas as pl
from jax.experimental.pallas import tpu as pltpu

_MiB = 1024 * 1024
_DEFAULT_VMEM_BUDGET = 48 * _MiB          # streamed-buffer budget (safe on v7x's 64 MiB)
_VMEM_LIMIT_CAP = 56 * _MiB               # never auto-request more than this
_SINGLE_BUFFER_MIN_BYTES = 1 * _MiB       # only bother single-buffering big resident blocks


def _round_up(x, m):
    return (x + m - 1) // m * m


def _embed_kernel(x_ref, w_ref, b_ref, o_ref):
    # x_ref: (tm, K)      compute-dtype patch tile (streamed)
    # w_ref: (K, E_out)   compute-dtype projection (VMEM-resident across grid steps)
    # b_ref: (1, E_out)   f32 bias               (VMEM-resident across grid steps)
    # o_ref: (tm, E_out)  output tile
    acc = jnp.dot(x_ref[...], w_ref[...], preferred_element_type=jnp.float32)
    o_ref[...] = (acc + b_ref[...]).astype(o_ref.dtype)


def symbolic_embedding(symb_values, weight, bias, patch_size, *,
                       compute_dtype=jnp.bfloat16, out_dtype=None,
                       block_m=1024, m_align=256, vmem_limit_bytes=None):
    """Pallas TPU equivalent of SymbolicEmbedding.forward.

    symb_values: (B, 3, P, P*S) NCHW, like PyTorch.
    weight: (E, 3, P, P) torch Conv2d layout.  bias: (E,).
    Returns (B, S, E) in `out_dtype` (default: symb_values.dtype, matching
    Conv2d -> flatten(2) -> transpose(1, 2)).
    """
    B, C, H, W = symb_values.shape
    P = patch_size
    if H != P or W % P != 0:
        raise ValueError(f"Input image size ({H}*{W}) doesn't match patch size {P}.")
    S = W // P
    E = weight.shape[0]
    K = C * P * P
    M = B * S
    out_dtype = symb_values.dtype if out_dtype is None else out_dtype

    # --- patch extraction; per-patch flatten order is (c, kh, kw), matching torch Conv2d ---
    # (B, C, P, S*P) -> (B, C, P, S, P) -> (B, S, C, P, P) -> (M, K)
    patches = symb_values.reshape(B, C, P, S, P)
    patches = jnp.transpose(patches, (0, 3, 1, 2, 4)).reshape(M, K)
    # Cast here so XLA fuses it with the transpose (one HBM pass); K stays UNPADDED in HBM.
    x = patches.astype(compute_dtype)

    # --- output lane handling: pad E only when it helps (>=128 and not lane-aligned) ---
    if E % 128 == 0 or E < 128:
        E_out = E
    else:
        E_out = _round_up(E, 128)

    w_mat = weight.reshape(E, K).T.astype(compute_dtype)
    b_row = bias.astype(jnp.float32).reshape(1, E)
    if E_out != E:
        w_mat = jnp.pad(w_mat, ((0, 0), (0, E_out - E)))
        b_row = jnp.pad(b_row, ((0, 0), (0, E_out - E)))

    in_itemsize = jnp.dtype(compute_dtype).itemsize
    out_itemsize = jnp.dtype(out_dtype).itemsize

    # --- M tiling ---
    if M <= block_m:
        # Small problem (e.g. the shipped B=2, S=16 config): single grid step, no padding
        # beyond sublane alignment, no per-step pallas overhead.
        tm = _round_up(M, 8)
    else:
        align = m_align if block_m >= m_align else 8
        tm = _round_up(min(block_m, M), align)
        # Keep >= 4 grid steps: v7x splits the 'parallel' axis across 2 TensorCores and
        # each core still needs >= 2 steps to double-buffer.
        while tm > align and pl.cdiv(M, tm) < 4:
            tm -= align
        # Prefer a tile that divides M exactly (skips M padding and the epilogue slice).
        for cand in range(tm, align - 1, -align):
            if M % cand == 0:
                tm = cand
                break

    # --- resident weight / bias: single-buffer them when large (constant index_map) ---
    resident_w_bytes = K * E_out * in_itemsize
    resident_kwargs = {}
    w_buf_count = 2
    if resident_w_bytes >= _SINGLE_BUFFER_MIN_BYTES:
        resident_kwargs = dict(pipeline_mode=pl.Buffered(1))
        w_buf_count = 1

    # --- VMEM budget: shrink tm if the streamed buffers would not fit ---
    def vmem_need(t):
        return (2 * t * K * in_itemsize            # double-buffered x tiles
                + 2 * t * E_out * out_itemsize     # double-buffered out tiles
                + w_buf_count * resident_w_bytes
                + 2 * E_out * 4)                   # bias

    budget = vmem_limit_bytes if vmem_limit_bytes is not None else _DEFAULT_VMEM_BUDGET
    while vmem_need(tm) > budget and tm > 16:
        tm = max(16, _round_up(tm // 2, 8))

    M_pad = _round_up(M, tm)
    if M_pad != M:
        x = jnp.pad(x, ((0, M_pad - M), (0, 0)))

    grid = (M_pad // tm,)

    if vmem_limit_bytes is None:
        # Raise the scoped-VMEM default (16 MiB v5e / 32 MiB v6e,v7x) only as much as
        # needed, capped well under v7x's 64 MiB physical VMEM.
        vmem_limit_bytes = min(_VMEM_LIMIT_CAP, max(32 * _MiB, vmem_need(tm) + 8 * _MiB))

    cost = pl.CostEstimate(
        flops=2 * M_pad * K * E_out,
        transcendentals=0,
        bytes_accessed=int(M_pad * K * in_itemsize
                           + K * E_out * in_itemsize
                           + E_out * 4
                           + M_pad * E_out * out_itemsize),
    )

    out = pl.pallas_call(
        _embed_kernel,
        out_shape=jax.ShapeDtypeStruct((M_pad, E_out), out_dtype),
        grid=grid,
        in_specs=[
            pl.BlockSpec((tm, K), lambda i: (i, 0)),
            pl.BlockSpec((K, E_out), lambda i: (0, 0), **resident_kwargs),   # resident
            pl.BlockSpec((1, E_out), lambda i: (0, 0), **resident_kwargs),   # resident
        ],
        out_specs=pl.BlockSpec((tm, E_out), lambda i: (i, 0)),
        compiler_params=pltpu.CompilerParams(
            dimension_semantics=("parallel",),
            vmem_limit_bytes=int(vmem_limit_bytes),
        ),
        cost_estimate=cost,
    )(x, w_mat, b_row)

    # Epilogue slice only when padding was actually added (it is a full extra output pass).
    if M_pad != M or E_out != E:
        out = out[:M, :E]
    return out.reshape(B, S, E)


def _reference(x, weight, bias, P):
    """Pure-JAX f32 reference (conv-as-matmul, identical math to the PyTorch module)."""
    B, C, _, W = x.shape
    S = W // P
    E = weight.shape[0]
    patches = jnp.transpose(x.reshape(B, C, P, S, P), (0, 3, 1, 2, 4)).reshape(B * S, C * P * P)
    return (patches @ weight.reshape(E, -1).T + bias).reshape(B, S, E)


if __name__ == "__main__":
    key = jax.random.PRNGKey(0)

    # --- Test 1: shipped config (num_channels=3, P=4, S=16, E=32) ---------------------
    # Tiny problem -> single grid step, no padding, f32 compute path (full precision).
    batch, P, S, E, C = 2, 4, 16, 32, 3
    k1, k2, k3, key = jax.random.split(key, 4)
    x = jax.random.normal(k1, (batch, C, P, P * S), dtype=jnp.float32)
    w = jax.random.normal(k2, (E, C, P, P), dtype=jnp.float32) * 0.02
    b = jax.random.normal(k3, (E,), dtype=jnp.float32) * 0.02

    fn = jax.jit(functools.partial(symbolic_embedding, patch_size=P,
                                   compute_dtype=jnp.float32))
    out = jax.block_until_ready(fn(x, w, b))
    ref = _reference(x, w, b, P)
    assert out.shape == (batch, S, E)
    assert out.dtype == x.dtype
    assert jnp.allclose(out, ref, atol=1e-3, rtol=1e-3), float(jnp.max(jnp.abs(out - ref)))

    # --- Test 2: larger config -> multi-step 'parallel' grid, bf16 compute, bf16 out ---
    batch, P, S, E, C = 4, 4, 64, 256, 3
    k1, k2, k3, key = jax.random.split(key, 4)
    x = jax.random.normal(k1, (batch, C, P, P * S), dtype=jnp.float32)
    w = jax.random.normal(k2, (E, C, P, P), dtype=jnp.float32) * 0.02
    b = jax.random.normal(k3, (E,), dtype=jnp.float32) * 0.02

    fn = jax.jit(functools.partial(symbolic_embedding, patch_size=P,
                                   compute_dtype=jnp.bfloat16,
                                   out_dtype=jnp.bfloat16, block_m=64))
    out = jax.block_until_ready(fn(x, w, b))
    ref = _reference(x, w, b, P)
    assert out.shape == (batch, S, E)
    assert out.dtype == jnp.bfloat16
    assert jnp.allclose(out.astype(jnp.float32), ref, atol=2e-2, rtol=2e-2), \
        float(jnp.max(jnp.abs(out.astype(jnp.float32) - ref)))

    print("KERNEL_OK")
</pallas_src>

<mosaic_0001>
module attributes {stable_mosaic.version = 11 : i64} {
  func.func @_embed_kernel(%arg0: i32, %arg1: memref<32x48xf32, #tpu.memory_space<vmem>>, %arg2: memref<48x32xf32, #tpu.memory_space<vmem>>, %arg3: memref<1x32xf32, #tpu.memory_space<vmem>>, %arg4: memref<32x32xf32, #tpu.memory_space<vmem>>) attributes {dimension_semantics = [#tpu.dimension_semantics<parallel>], iteration_bounds = array<i64: 1>, scalar_prefetch = 0 : i64, scratch_operands = 0 : i64, tpu.core_type = #tpu.core_type<tc>, window_params = [{transform_indices = @transform_0, window_bounds = array<i64: 32, 48>}, {pipeline_mode = #tpu.pipeline_mode<synchronous>, transform_indices = @transform_1, window_bounds = array<i64: 48, 32>}, {pipeline_mode = #tpu.pipeline_mode<synchronous>, transform_indices = @transform_2, window_bounds = array<i64: 1, 32>}, {transform_indices = @transform_3, window_bounds = array<i64: 32, 32>}]} {
    %c0 = arith.constant 0 : index
    %c0_0 = arith.constant 0 : index
    %0 = vector.load %arg1[%c0, %c0_0] : memref<32x48xf32, #tpu.memory_space<vmem>>, vector<32x48xf32>
    %c0_1 = arith.constant 0 : index
    %c0_2 = arith.constant 0 : index
    %1 = vector.load %arg2[%c0_1, %c0_2] : memref<48x32xf32, #tpu.memory_space<vmem>>, vector<48x32xf32>
    %cst = arith.constant dense<0.000000e+00> : vector<32x32xf32>
    %2 = tpu.matmul %0, %1, %cst {dimension_numbers = #tpu.dot_dimension_numbers<[1], [0], [0], [1], [0, 0, 1, 1], [], []>} : vector<32x48xf32>, vector<48x32xf32>, vector<32x32xf32> -> vector<32x32xf32>
    %c0_3 = arith.constant 0 : index
    %c0_4 = arith.constant 0 : index
    %3 = vector.load %arg3[%c0_3, %c0_4] : memref<1x32xf32, #tpu.memory_space<vmem>>, vector<1x32xf32>
    %4 = vector.broadcast %3 : vector<1x32xf32> to vector<32x32xf32>
    %5 = arith.addf %2, %4 : vector<32x32xf32>
    %c0_5 = arith.constant 0 : index
    %c0_6 = arith.constant 0 : index
    %6 = vector.load %arg4[%c0_5, %c0_6] : memref<32x32xf32, #tpu.memory_space<vmem>>, vector<32x32xf32>
    tpu.vector_store %arg4[%c0_5, %c0_6], %5 {strides = array<i32>} : memref<32x32xf32, #tpu.memory_space<vmem>>, vector<32x32xf32>,
    return
  }
  func.func @transform_0(%arg0: i32) -> (i32, i32) {
    %c0_i32 = arith.constant 0 : i32
    %c0_i32_0 = arith.constant 0 : i32
    return %arg0, %c0_i32 : i32, i32
  }
  func.func @transform_1(%arg0: i32) -> (i32, i32) {
    %c0_i32 = arith.constant 0 : i32
    %c0_i32_0 = arith.constant 0 : i32
    %c0_i32_1 = arith.constant 0 : i32
    return %c0_i32, %c0_i32_0 : i32, i32
  }
  func.func @transform_2(%arg0: i32) -> (i32, i32) {
    %c0_i32 = arith.constant 0 : i32
    %c0_i32_0 = arith.constant 0 : i32
    %c0_i32_1 = arith.constant 0 : i32
    return %c0_i32, %c0_i32_0 : i32, i32
  }
  func.func @transform_3(%arg0: i32) -> (i32, i32) {
    %c0_i32 = arith.constant 0 : i32
    %c0_i32_0 = arith.constant 0 : i32
    return %arg0, %c0_i32 : i32, i32
  }
}

</mosaic_0001>

<bundles_post_ra>
// kernel: symbolic_embedding.1
= control target key start
LH: loop header
LB: loop body
LE: loop exit
PB: predicated region body
PF: predicated region fallthrough
CT: control target
= control target key end

     0   :  { %vm32_vm0 = vcmask 392192   ;;  %s301_s0 = inlined_call_operand.vmem [shape: f32[32,48], index: 0, kind: input, shape index: {}]   ;;  %s302_s1 = inlined_call_operand.vmem [shape: f32[48,32], index: 1, kind: input, shape index: {}]   ;;  %s303_s2 = inlined_call_operand.vmem [shape: f32[1,32], index: 2, kind: input, shape index: {}]   ;;  %s304_s3 = inlined_call_operand.hbm [shape: f32[32,32], index: 3, kind: output, shape index: {}]  }
   0x1   :  { %v19_v0 = vld [vmem:[%s302_s1] sm:$0xff]  ;;  %v20_v1 = vld [vmem:[%s302_s1 + $0x8] sm:$0xff]  ;;  %v21_v2 = vld [vmem:[%s302_s1 + $0x10] sm:$0xff] }
   0x2   :  { %v184_v3 = vpack.c.bf16 %v20_v1, %v19_v0  ;;  %v22_v4 = vld [vmem:[%s302_s1 + $0x18] sm:$0xff]  ;;  %v23_v6 = vld [vmem:[%s302_s1 + $0x20] sm:$0xff]  ;;  %v24_v7 = vld [vmem:[%s302_s1 + $0x28] sm:$0xff] }
   0x3   :  { %v188_v5 = vpack.c.bf16 %v22_v4, %v21_v2  ;;  %v15_v8 = vld [vmem:[%s301_s0] sm:$0xff]  ;;  %v17_v9 = vld [vmem:[%s301_s0 + $0x10] sm:$0xff] }
   0x4   :  { %185 = vmatprep.subr.bf16.mxu0 %v184_v3  ;;  %196 = vmatprep.subr.bf16.mxu1 %v184_v3 }
   0x5   :  { %8 = vsyncpa [#allocation3], 0  ;;  %187 = vmatpush3.bf16.msra.mxu0 %v184_v3  ;;  %199 = vmatpush3.bf16.msra.mxu1 %v184_v3  ;;  %v192_v10 = vpack.c.bf16 %v24_v7, %v23_v6  ;;  %v16_v11 = vld [vmem:[%s301_s0 + $0x8] sm:$0xff]  ;;  %v18_v12 = vld [vmem:[%s301_s0 + $0x18] sm:$0xff]  ;;  %s229_s6 = smov [#allocation2]   ;;  %vm130_vm1 = vcmask 261120  }
   0x6   :  { %189 = vmatprep.subr.bf16.mxu0 %v188_v5  ;;  %197 = vmatprep.subr.bf16.mxu1 %v188_v5  ;;  %v151_v13 = vld [vmem:[%s303_s2] ss:$0 sm:$0xff]  ;;  %s140_s7 = sshll.u32 %s229_s6, 4  ;;  %s141_s7 = int_to_ptr.vmem [resolvable:$true] %s140_s7 }
   0x7   :  { %178 = vmatprep.mubr.msk.f32.mxu0 %vm32_vm0, %v15_v8  ;;  %181 = vmatprep.mubr.msk.f32.mxu1 %vm32_vm0, %v17_v9  ;;  %s205_s0 = scalar_lea.vmem %s141_s7, 512  ;;  %p210_p1 = scmp.lt.s32.totalorder %s141_s7, %s141_s7 }
   0x8   :  { %p206_p0 = scmp.ne.s32.totalorder %s141_s7, %s205_s0  ;;  %p211_p2 = scmp.lt.s32.totalorder %s205_s0, %s205_s0 }
   0x9   :  { %191 = vmatpush3.bf16.msra.mxu0 %v188_v5  ;;  %200 = vmatpush3.bf16.msra.mxu1 %v188_v5 }
   0xa   :  { %193 = vmatprep.subr.bf16.mxu0 %v192_v10  ;;  %198 = vmatprep.subr.bf16.mxu1 %v192_v10  ;;  %p212_p3 = por %p211_p2, %p210_p1 }
   0xc   :  { %p213_p4 = pnand %p212_p3, %p206_p0 }
   0xd   :  { %195 = vmatpush3.bf16.msra.mxu0 %v192_v10  ;;  %201 = vmatpush3.bf16.msra.mxu1 %v192_v10 }
  0x10   :  { %179 = vmatmul.mubr.msk.f32.vlgmr.msra.gmra.mrb[0].mxu0 %vm32_vm0, %v16_v11  ;;  %182 = vmatmul.mubr.msk.f32.vlgmr.msra.gmra.mrb[0].mxu1 %vm32_vm0, %v18_v12 }
  0xe3   :  { %v180_v14 = vpop.f32.mrb[0].mxu0  ;;  %v183_v15 = vpop.f32.mrb[0].mxu1 }
  0xe4   :  { %v117_v16 = vadd.f32 %v180_v14, %v151_v13  ;;  %v127_v17 = vadd.f32 %v183_v15, %v151_v13  ;;  %v111_v18 = vpop.f32.mrb[1].mxu0  ;;  %v121_v19 = vpop.f32.mrb[1].mxu1 }
  0xe5   :  { %v112_v20 = vadd.f32 %v151_v13, %v111_v18  ;;  %v122_v21 = vadd.f32 %v151_v13, %v121_v19 }
  0xe6   :  { %132 = vst.msk [vmem:[#allocation2 + $0x8] sm:$0xff] %vm130_vm1, %v117_v16  ;;  %134 = vst.msk [vmem:[#allocation2 + $0x18] sm:$0xff] %vm130_vm1, %v127_v17 }
  0xe7   :  { %131 = vst.msk [vmem:[#allocation2] sm:$0xff] %vm130_vm1, %v112_v20  ;;  %133 = vst.msk [vmem:[#allocation2 + $0x10] sm:$0xff] %vm130_vm1, %v122_v21 }
  0xe8   :  { %216 = shalt.err (!%p213_p4)
}
  0xe9   :  { %s217_s9 = scalar_lea.hbm %s304_s3, 512 }
  0xea   :  { %p218_p5 = scmp.ne.s32.totalorder %s304_s3, %s217_s9  ;;  %p221_p6 = scmp.lt.u32.totalorder %s217_s9, %s304_s3 }
  0xec   :  { %p223_p7 = pnand %p221_p6, %p218_p5 }
  0xee   :  { %226 = shalt.err (!%p223_p7)
}
  0xef   :  { %s230_s14 = smov 128   ;;  %s231_s15 = smov 8  }
  0xf0   :  { %146 = dma.vmem_to_hbm [thread:$0]  %s141_s7, 512, %s304_s3, [#allocation3], %s230_s14, %s230_s14, %s231_s15  }
  0xf1   :  { %227 = dma.done.wait [#allocation3], 512  }
  0xf2   :  { %228 = vsyncadd [#allocation3], 4294966784 }
  0xf3   :  { %150 = vsyncpa [#allocation3], 1 }

</bundles_post_ra>
